<compile_context>
chip_gen: v7x
topology: tpu7x:2x2x1
jax: 0.10.0
libtpu: 0.0.40
codegen_flags: <defaults>
</compile_context>

<pallas_src>
import functools

import jax
import jax.numpy as jnp
import numpy as np
from jax.experimental import pallas as pl
from jax.experimental.pallas import tpu as pltpu


def _round_up(x, m):
    return ((x + m - 1) // m) * m


def _make_f1_kernel(n, c, k, tn, r):
    """Kernel closure over static sizes: n samples, c classes, k scored labels."""

    def kernel(pred_ref, truth_ref, out_ref, tp_acc, pr_acc, tr_acc):
        i = pl.program_id(0)
        nt = pl.num_programs(0)

        @pl.when(i == 0)
        def _init():
            tp_acc[...] = jnp.zeros_like(tp_acc)
            pr_acc[...] = jnp.zeros_like(pr_acc)
            tr_acc[...] = jnp.zeros_like(tr_acc)

        pred = pred_ref[...]          # (c, tn) f32, samples on lanes
        truth = truth_ref[...]        # (1, tn) i32

        # Mask out padded lanes of the (possibly partial) last tile.
        lane = jax.lax.broadcasted_iota(jnp.int32, (1, tn), 1)
        valid = (i * tn + lane) < n                       # (1, tn) bool

        # argmax over classes (sublane axis), first-occurrence like np.argmax.
        cls = jax.lax.broadcasted_iota(jnp.int32, (c, tn), 0)
        col_max = jnp.max(pred, axis=0, keepdims=True)    # (1, tn)
        pred_label = jnp.min(jnp.where(pred == col_max, cls, jnp.int32(c)),
                             axis=0, keepdims=True)       # (1, tn) i32

        # One-hot confusion contributions for scored labels 0..k-1.
        kcls = jax.lax.broadcasted_iota(jnp.int32, (k, tn), 0)
        pred_oh = (pred_label == kcls) & valid            # (k, tn) bool
        true_oh = (truth == kcls) & valid                 # (k, tn) bool
        tp_oh = true_oh & (pred_label == truth)           # correct & this class

        # Exact integer accumulation, lane-parallel (no per-tile reduce).
        tp_acc[...] += tp_oh.astype(jnp.int32)
        pr_acc[...] += pred_oh.astype(jnp.int32)
        tr_acc[...] += true_oh.astype(jnp.int32)

        @pl.when(i == nt - 1)
        def _finalize():
            one = jnp.float32(1.0)
            tp = jnp.sum(tp_acc[...], axis=1, keepdims=True).astype(jnp.float32)  # (k,1)
            ps = jnp.sum(pr_acc[...], axis=1, keepdims=True).astype(jnp.float32)  # TP+FP
            ts = jnp.sum(tr_acc[...], axis=1, keepdims=True).astype(jnp.float32)  # TP+FN
            # f1 = 2*tp / (pred_sum + true_sum); zero_division=1 when both are 0.
            denom = ps + ts
            f1 = jnp.where(denom > 0.0,
                           2.0 * tp / jnp.where(denom > 0.0, denom, one),
                           one)                                              # (k,1)
            # Support-weighted average (epilogue folded into the kernel).
            tot = jnp.sum(ts, axis=0, keepdims=True)                         # (1,1)
            wnum = jnp.sum(f1 * ts, axis=0, keepdims=True)                   # (1,1)
            wavg = wnum / jnp.maximum(tot, one)                              # (1,1)

            # Lane-dense output slab: rows 0..k-1 = per-class f1, row k = weighted.
            f1_rows = jnp.broadcast_to(f1, (k, 128))
            w_rows = jnp.broadcast_to(wavg, (r - k, 128))
            out_ref[...] = jnp.concatenate([f1_rows, w_rows], axis=0)

    return kernel


@functools.partial(jax.jit, static_argnames=("k", "max_tn"))
def _f1_forward(prediction, truth, k, max_tn=8192):
    n, c = prediction.shape
    pred_t = prediction.T                 # (C, N): samples on the 128-lane axis
    truth2 = truth.reshape(1, n).astype(jnp.int32)

    # Tile size over N: biggest lane-multiple that keeps double-buffered inputs
    # + 3 int32 accumulators comfortably under every generation's scoped VMEM.
    c_pad = _round_up(c, 8)
    k_pad = _round_up(k, 8)
    bytes_per_lane = 4 * (2 * c_pad + 3 * k_pad + 2)
    tn = (6 * 1024 * 1024) // bytes_per_lane
    tn = max(128, min(int(max_tn), (tn // 128) * 128))
    tn = min(tn, _round_up(n, 128))
    r = max(8, _round_up(k + 1, 8))
    grid = (pl.cdiv(n, tn),)

    return pl.pallas_call(
        _make_f1_kernel(n, c, k, tn, r),
        out_shape=jax.ShapeDtypeStruct((r, 128), jnp.float32),
        grid=grid,
        in_specs=[pl.BlockSpec((c, tn), lambda i: (0, i)),
                  pl.BlockSpec((1, tn), lambda i: (0, i))],
        out_specs=pl.BlockSpec((r, 128), lambda i: (0, 0)),
        scratch_shapes=[pltpu.VMEM((k, tn), jnp.int32),
                        pltpu.VMEM((k, tn), jnp.int32),
                        pltpu.VMEM((k, tn), jnp.int32)],
        compiler_params=pltpu.CompilerParams(
            dimension_semantics=("arbitrary",)),
    )(pred_t, truth2)


class F1:
    """Pallas re-implementation of the PyTorch F1 metric module."""

    GENRE_LABELS = 5  # labels=[0,1,2,3,4]

    def __init__(self, task):
        self.task = task

    def __call__(self, prediction, truth, max_tn=8192):
        prediction = jnp.asarray(prediction, jnp.float32)
        truth = jnp.asarray(truth, jnp.int32).reshape(-1)
        n, c = prediction.shape
        k = self.GENRE_LABELS if self.task == 'genre' else c
        # TODO(synk): weighted path assumes truth labels lie in [0, C); sklearn's
        # label-union would also include out-of-range truth labels as zero-F1 classes.
        out = _f1_forward(prediction, truth, k=k, max_tn=max_tn)
        if self.task == 'genre':
            return out[:k, 0]         # per-class F1, shape (5,)
        return out[k, 0]              # support-weighted F1 scalar

    forward = __call__


def _reference_f1(pred_np, truth_np, k):
    """Plain numpy reference (sklearn semantics, zero_division=1)."""
    lbl = pred_np.argmax(axis=1)
    tp = np.array([np.sum((lbl == j) & (truth_np == j)) for j in range(k)], np.float64)
    ps = np.array([np.sum(lbl == j) for j in range(k)], np.float64)
    ts = np.array([np.sum(truth_np == j) for j in range(k)], np.float64)
    d = ps + ts
    f1 = np.where(d > 0, 2.0 * tp / np.maximum(d, 1.0), 1.0)
    w = float(np.sum(f1 * ts) / max(float(np.sum(ts)), 1.0))
    return f1, w


if __name__ == "__main__":
    key = jax.random.PRNGKey(0)
    k_pred, k_truth = jax.random.split(key)

    N, C = 8, 5
    prediction = jax.random.normal(k_pred, (N, C), dtype=jnp.float32)
    truth = jax.random.randint(k_truth, (N,), 0, C, dtype=jnp.int32)

    f1_genre = jax.block_until_ready(F1('genre')(prediction, truth))
    f1_weighted = jax.block_until_ready(F1('other')(prediction, truth))

    f1_ref, w_ref = _reference_f1(np.asarray(prediction), np.asarray(truth), 5)
    assert f1_genre.shape == (5,)
    np.testing.assert_allclose(np.asarray(f1_genre), f1_ref, atol=1e-6)
    np.testing.assert_allclose(float(f1_weighted), w_ref, atol=1e-6)

    # Multi-tile + padded-lane path: N not a multiple of the lane tile, 3 tiles.
    N2 = 300
    pred2 = jax.random.normal(jax.random.PRNGKey(1), (N2, C), dtype=jnp.float32)
    truth2 = jax.random.randint(jax.random.PRNGKey(2), (N2,), 0, C, dtype=jnp.int32)
    f1_g2 = jax.block_until_ready(F1('genre')(pred2, truth2, max_tn=128))
    f1_w2 = jax.block_until_ready(F1('other')(pred2, truth2, max_tn=128))
    f1_ref2, w_ref2 = _reference_f1(np.asarray(pred2), np.asarray(truth2), 5)
    np.testing.assert_allclose(np.asarray(f1_g2), f1_ref2, atol=1e-6)
    np.testing.assert_allclose(float(f1_w2), w_ref2, atol=1e-6)

    print("KERNEL_OK")
</pallas_src>

<mosaic_0001>
module attributes {stable_mosaic.version = 11 : i64} {
  func.func @kernel(%arg0: i32, %arg1: memref<5x128xf32, #tpu.memory_space<vmem>>, %arg2: memref<1x128xi32, #tpu.memory_space<vmem>>, %arg3: memref<8x128xf32, #tpu.memory_space<vmem>>, %arg4: memref<5x128xi32, #tpu.memory_space<vmem>>, %arg5: memref<5x128xi32, #tpu.memory_space<vmem>>, %arg6: memref<5x128xi32, #tpu.memory_space<vmem>>) attributes {dimension_semantics = [#tpu.dimension_semantics<arbitrary>], iteration_bounds = array<i64: 1>, scalar_prefetch = 0 : i64, scratch_operands = 3 : i64, tpu.core_type = #tpu.core_type<tc>, window_params = [{transform_indices = @transform_0, window_bounds = array<i64: 5, 128>}, {transform_indices = @transform_1, window_bounds = array<i64: 1, 128>}, {pipeline_mode = #tpu.pipeline_mode<synchronous>, transform_indices = @transform_2, window_bounds = array<i64: 8, 128>}]} {
    %c0_i32 = arith.constant 0 : i32
    %0 = arith.cmpi eq, %arg0, %c0_i32 : i32
    %1 = arith.extui %0 : i1 to i32
    %c0_i32_0 = arith.constant 0 : i32
    %2 = arith.cmpi ne, %1, %c0_i32_0 : i32
    scf.if %2 {
      %c0_i32_19 = arith.constant 0 : i32
      %47 = vector.broadcast %c0_i32_19 : i32 to vector<5x128xi32>
      %c0_20 = arith.constant 0 : index
      %c0_21 = arith.constant 0 : index
      %48 = vector.load %arg4[%c0_20, %c0_21] : memref<5x128xi32, #tpu.memory_space<vmem>>, vector<5x128xi32>
      tpu.vector_store %arg4[%c0_20, %c0_21], %47 {strides = array<i32>} : memref<5x128xi32, #tpu.memory_space<vmem>>, vector<5x128xi32>,
      %c0_i32_22 = arith.constant 0 : i32
      %49 = vector.broadcast %c0_i32_22 : i32 to vector<5x128xi32>
      %c0_23 = arith.constant 0 : index
      %c0_24 = arith.constant 0 : index
      %50 = vector.load %arg5[%c0_23, %c0_24] : memref<5x128xi32, #tpu.memory_space<vmem>>, vector<5x128xi32>
      tpu.vector_store %arg5[%c0_23, %c0_24], %49 {strides = array<i32>} : memref<5x128xi32, #tpu.memory_space<vmem>>, vector<5x128xi32>,
      %c0_i32_25 = arith.constant 0 : i32
      %51 = vector.broadcast %c0_i32_25 : i32 to vector<5x128xi32>
      %c0_26 = arith.constant 0 : index
      %c0_27 = arith.constant 0 : index
      %52 = vector.load %arg6[%c0_26, %c0_27] : memref<5x128xi32, #tpu.memory_space<vmem>>, vector<5x128xi32>
      tpu.vector_store %arg6[%c0_26, %c0_27], %51 {strides = array<i32>} : memref<5x128xi32, #tpu.memory_space<vmem>>, vector<5x128xi32>,
    } else {
    }
    %c0 = arith.constant 0 : index
    %c0_1 = arith.constant 0 : index
    %3 = vector.load %arg1[%c0, %c0_1] : memref<5x128xf32, #tpu.memory_space<vmem>>, vector<5x128xf32>
    %c0_2 = arith.constant 0 : index
    %c0_3 = arith.constant 0 : index
    %4 = vector.load %arg2[%c0_2, %c0_3] : memref<1x128xi32, #tpu.memory_space<vmem>>, vector<1x128xi32>
    %5 = tpu.iota {dimensions = array<i32: 1>} : vector<1x128xi32>
    %c128_i32 = arith.constant 128 : i32
    %6 = arith.muli %arg0, %c128_i32 : i32
    %7 = vector.broadcast %6 : i32 to vector<1x128xi32>
    %8 = arith.addi %7, %5 : vector<1x128xi32>
    %c8_i32 = arith.constant 8 : i32
    %9 = vector.broadcast %c8_i32 : i32 to vector<1x128xi32>
    %10 = arith.cmpi slt, %8, %9 : vector<1x128xi32>
    %11 = tpu.iota {dimensions = array<i32: 0>} : vector<5x128xi32>
    %cst = arith.constant dense<0xFF800000> : vector<128xf32>
    %12 = vector.multi_reduction <maximumf>, %3, %cst [0] : vector<5x128xf32> to vector<128xf32>
    %13 = vector.shape_cast %12 : vector<128xf32> to vector<1x128xf32>
    %14 = vector.broadcast %13 : vector<1x128xf32> to vector<5x128xf32>
    %15 = arith.cmpf oeq, %3, %14 : vector<5x128xf32>
    %c5_i32 = arith.constant 5 : i32
    %16 = vector.broadcast %c5_i32 : i32 to vector<5x128xi32>
    %17 = arith.select %15, %11, %16 : vector<5x128xi1>, vector<5x128xi32>
    %cst_4 = arith.constant dense<2147483647> : vector<128xi32>
    %18 = vector.multi_reduction <minsi>, %17, %cst_4 [0] : vector<5x128xi32> to vector<128xi32>
    %19 = vector.shape_cast %18 : vector<128xi32> to vector<1x128xi32>
    %20 = tpu.iota {dimensions = array<i32: 0>} : vector<5x128xi32>
    %21 = vector.broadcast %19 : vector<1x128xi32> to vector<5x128xi32>
    %22 = arith.cmpi eq, %21, %20 : vector<5x128xi32>
    %23 = vector.broadcast %10 : vector<1x128xi1> to vector<5x128xi1>
    %24 = arith.andi %22, %23 : vector<5x128xi1>
    %25 = vector.broadcast %4 : vector<1x128xi32> to vector<5x128xi32>
    %26 = arith.cmpi eq, %25, %20 : vector<5x128xi32>
    %27 = vector.broadcast %10 : vector<1x128xi1> to vector<5x128xi1>
    %28 = arith.andi %26, %27 : vector<5x128xi1>
    %29 = arith.cmpi eq, %19, %4 : vector<1x128xi32>
    %30 = vector.broadcast %29 : vector<1x128xi1> to vector<5x128xi1>
    %31 = arith.andi %28, %30 : vector<5x128xi1>
    %c0_5 = arith.constant 0 : index
    %c0_6 = arith.constant 0 : index
    %32 = vector.load %arg4[%c0_5, %c0_6] : memref<5x128xi32, #tpu.memory_space<vmem>>, vector<5x128xi32>
    %33 = arith.extui %31 : vector<5x128xi1> to vector<5x128xi32>
    %34 = arith.addi %32, %33 : vector<5x128xi32>
    %c0_7 = arith.constant 0 : index
    %c0_8 = arith.constant 0 : index
    %35 = vector.load %arg4[%c0_7, %c0_8] : memref<5x128xi32, #tpu.memory_space<vmem>>, vector<5x128xi32>
    tpu.vector_store %arg4[%c0_7, %c0_8], %34 {strides = array<i32>} : memref<5x128xi32, #tpu.memory_space<vmem>>, vector<5x128xi32>,
    %c0_9 = arith.constant 0 : index
    %c0_10 = arith.constant 0 : index
    %36 = vector.load %arg5[%c0_9, %c0_10] : memref<5x128xi32, #tpu.memory_space<vmem>>, vector<5x128xi32>
    %37 = arith.extui %24 : vector<5x128xi1> to vector<5x128xi32>
    %38 = arith.addi %36, %37 : vector<5x128xi32>
    %c0_11 = arith.constant 0 : index
    %c0_12 = arith.constant 0 : index
    %39 = vector.load %arg5[%c0_11, %c0_12] : memref<5x128xi32, #tpu.memory_space<vmem>>, vector<5x128xi32>
    tpu.vector_store %arg5[%c0_11, %c0_12], %38 {strides = array<i32>} : memref<5x128xi32, #tpu.memory_space<vmem>>, vector<5x128xi32>,
    %c0_13 = arith.constant 0 : index
    %c0_14 = arith.constant 0 : index
    %40 = vector.load %arg6[%c0_13, %c0_14] : memref<5x128xi32, #tpu.memory_space<vmem>>, vector<5x128xi32>
    %41 = arith.extui %28 : vector<5x128xi1> to vector<5x128xi32>
    %42 = arith.addi %40, %41 : vector<5x128xi32>
    %c0_15 = arith.constant 0 : index
    %c0_16 = arith.constant 0 : index
    %43 = vector.load %arg6[%c0_15, %c0_16] : memref<5x128xi32, #tpu.memory_space<vmem>>, vector<5x128xi32>
    tpu.vector_store %arg6[%c0_15, %c0_16], %42 {strides = array<i32>} : memref<5x128xi32, #tpu.memory_space<vmem>>, vector<5x128xi32>,
    %c0_i32_17 = arith.constant 0 : i32
    %44 = arith.cmpi eq, %arg0, %c0_i32_17 : i32
    %45 = arith.extui %44 : i1 to i32
    %c0_i32_18 = arith.constant 0 : i32
    %46 = arith.cmpi ne, %45, %c0_i32_18 : i32
    scf.if %46 {
      %c0_19 = arith.constant 0 : index
      %c0_20 = arith.constant 0 : index
      %47 = vector.load %arg4[%c0_19, %c0_20] : memref<5x128xi32, #tpu.memory_space<vmem>>, vector<5x128xi32>
      %cst_21 = arith.constant dense<0> : vector<5xi32>
      %48 = vector.multi_reduction <add>, %47, %cst_21 [1] : vector<5x128xi32> to vector<5xi32>
      %49 = vector.shape_cast %48 : vector<5xi32> to vector<5x1xi32>
      %50 = arith.sitofp %49 : vector<5x1xi32> to vector<5x1xf32>
      %c0_22 = arith.constant 0 : index
      %c0_23 = arith.constant 0 : index
      %51 = vector.load %arg5[%c0_22, %c0_23] : memref<5x128xi32, #tpu.memory_space<vmem>>, vector<5x128xi32>
      %cst_24 = arith.constant dense<0> : vector<5xi32>
      %52 = vector.multi_reduction <add>, %51, %cst_24 [1] : vector<5x128xi32> to vector<5xi32>
      %53 = vector.shape_cast %52 : vector<5xi32> to vector<5x1xi32>
      %54 = arith.sitofp %53 : vector<5x1xi32> to vector<5x1xf32>
      %c0_25 = arith.constant 0 : index
      %c0_26 = arith.constant 0 : index
      %55 = vector.load %arg6[%c0_25, %c0_26] : memref<5x128xi32, #tpu.memory_space<vmem>>, vector<5x128xi32>
      %cst_27 = arith.constant dense<0> : vector<5xi32>
      %56 = vector.multi_reduction <add>, %55, %cst_27 [1] : vector<5x128xi32> to vector<5xi32>
      %57 = vector.shape_cast %56 : vector<5xi32> to vector<5x1xi32>
      %58 = arith.sitofp %57 : vector<5x1xi32> to vector<5x1xf32>
      %59 = arith.addf %54, %58 : vector<5x1xf32>
      %cst_28 = arith.constant 0.000000e+00 : f32
      %60 = vector.broadcast %cst_28 : f32 to vector<5x1xf32>
      %61 = arith.cmpf ogt, %59, %60 : vector<5x1xf32>
      %cst_29 = arith.constant 2.000000e+00 : f32
      %62 = vector.broadcast %cst_29 : f32 to vector<5x1xf32>
      %63 = arith.mulf %62, %50 : vector<5x1xf32>
      %cst_30 = arith.constant 0.000000e+00 : f32
      %64 = vector.broadcast %cst_30 : f32 to vector<5x1xf32>
      %65 = arith.cmpf ogt, %59, %64 : vector<5x1xf32>
      %cst_31 = arith.constant 1.000000e+00 : f32
      %66 = vector.broadcast %cst_31 : f32 to vector<5x1xf32>
      %67 = arith.select %65, %59, %66 : vector<5x1xi1>, vector<5x1xf32>
      %68 = arith.divf %63, %67 : vector<5x1xf32>
      %cst_32 = arith.constant 1.000000e+00 : f32
      %69 = vector.broadcast %cst_32 : f32 to vector<5x1xf32>
      %70 = arith.select %61, %68, %69 : vector<5x1xi1>, vector<5x1xf32>
      %cst_33 = arith.constant dense<0.000000e+00> : vector<1xf32>
      %71 = vector.multi_reduction <add>, %58, %cst_33 [0] : vector<5x1xf32> to vector<1xf32>
      %72 = vector.shape_cast %71 : vector<1xf32> to vector<1x1xf32>
      %73 = arith.mulf %70, %58 : vector<5x1xf32>
      %cst_34 = arith.constant dense<0.000000e+00> : vector<1xf32>
      %74 = vector.multi_reduction <add>, %73, %cst_34 [0] : vector<5x1xf32> to vector<1xf32>
      %75 = vector.shape_cast %74 : vector<1xf32> to vector<1x1xf32>
      %cst_35 = arith.constant 1.000000e+00 : f32
      %76 = vector.broadcast %cst_35 : f32 to vector<1x1xf32>
      %77 = arith.maximumf %72, %76 : vector<1x1xf32>
      %78 = arith.divf %75, %77 : vector<1x1xf32>
      %79 = vector.shape_cast %70 : vector<5x1xf32> to vector<5x1xf32>
      %80 = vector.broadcast %79 : vector<5x1xf32> to vector<5x128xf32>
      %81 = vector.shape_cast %78 : vector<1x1xf32> to vector<1x1xf32>
      %82 = vector.broadcast %81 : vector<1x1xf32> to vector<3x128xf32>
      %83 = tpu.concatenate %80, %82 in 0 : vector<5x128xf32>, vector<3x128xf32> -> vector<8x128xf32>
      %c0_36 = arith.constant 0 : index
      %c0_37 = arith.constant 0 : index
      %84 = vector.load %arg3[%c0_36, %c0_37] : memref<8x128xf32, #tpu.memory_space<vmem>>, vector<8x128xf32>
      tpu.vector_store %arg3[%c0_36, %c0_37], %83 {strides = array<i32>} : memref<8x128xf32, #tpu.memory_space<vmem>>, vector<8x128xf32>,
    } else {
    }
    return
  }
  func.func @transform_0(%arg0: i32) -> (i32, i32) {
    %c0_i32 = arith.constant 0 : i32
    %c0_i32_0 = arith.constant 0 : i32
    return %c0_i32, %arg0 : i32, i32
  }
  func.func @transform_1(%arg0: i32) -> (i32, i32) {
    %c0_i32 = arith.constant 0 : i32
    %c0_i32_0 = arith.constant 0 : i32
    return %c0_i32, %arg0 : i32, i32
  }
  func.func @transform_2(%arg0: i32) -> (i32, i32) {
    %c0_i32 = arith.constant 0 : i32
    %c0_i32_0 = arith.constant 0 : i32
    %c0_i32_1 = arith.constant 0 : i32
    return %c0_i32, %c0_i32_0 : i32, i32
  }
}

</mosaic_0001>

<bundles_post_ra>
// kernel: _f1_forward.1
= control target key start
LH: loop header
LB: loop body
LE: loop exit
PB: predicated region body
PF: predicated region fallthrough
CT: control target
= control target key end

     0   :  { %v21_v1 = vlaneseq  ;;  %vm29_vm0 = vcmask 1044480   ;;  %v198_v2 = vmov 0   ;;  %s251_s0 = inlined_call_operand.vmem [shape: f32[5,8], index: 0, kind: input, shape index: {}]   ;;  %s252_s1 = inlined_call_operand.vmem [shape: s32[1,8], index: 1, kind: input, shape index: {}]   ;;  %s253_s2 = inlined_call_operand.hbm [shape: f32[8,128], index: 2, kind: output, shape index: {}]  }
   0x1   :  { %v19_v0 = vld [vmem:[%s251_s0] sm:$0x1f]  ;;  %17 = vst [vmem:[#allocation3] sm:$0x1f] %v198_v2  ;;  %16 = vst [vmem:[#allocation2] sm:$0x1f] %v198_v2 }
   0x2   :  { %v30_v3 = vsel %vm29_vm0, %v19_v0, -inf  ;;  %18 = vst [vmem:[#allocation4] sm:$0x1f] %v198_v2 }
   0x3   :  { %7 = vsyncpa [#allocation6], 0  ;;  %v28_v4 = vshrl.u32 %v21_v1, 7  ;;  %v31_v5 = vrot.slane %v30_v3, 4  ;;  %v20_v6 = vld [vmem:[%s252_s1] sm:$0x1] }
   0x4   :  { %v22_v7 = vand.u32 127, %v21_v1  ;;  %s199_s0 = smov [#allocation5]  }
   0x5   :  { %v32_v8 = vmax.f32 %v30_v3, %v31_v5  ;;  %v55_v9 = vsub.s32 0, %v28_v4  ;;  %s160_s1 = sshll.u32 %s199_s0, 4  ;;  %s161_s1 = int_to_ptr.vmem [resolvable:$true] %s160_s1 }
   0x6   :  { %vm26_vm1 = vcmp.lt.s32.totalorder %v22_v7, 8  ;;  %s174_s13 = scalar_lea.vmem %s161_s1, 128  ;;  %p179_p1 = scmp.lt.s32.totalorder %s161_s1, %s161_s1 }
   0x7   :  { %v33_v10 = vrot.slane %v32_v8, 2  ;;  %v56_v11 = vrot.slane %v20_v6, %v55_v9  ;;  %p175_p0 = scmp.ne.s32.totalorder %s161_s1, %s174_s13  ;;  %p180_p2 = scmp.lt.s32.totalorder %s174_s13, %s174_s13 }
   0x8   :  { %v71_v27 = vld [vmem:[#allocation3] sm:$0x1f]  ;;  %v67_v32 = vld [vmem:[#allocation2] sm:$0x1f] }
   0x9   :  { %v34_v12 = vmax.f32 %v32_v8, %v33_v10  ;;  %vm57_vm2 = vcmp.eq.s32.totalorder %v56_v11, %v28_v4  ;;  %v75_v13 = vld [vmem:[#allocation4] sm:$0x1f]  ;;  %p181_p3 = por %p180_p2, %p179_p1 }
   0xa   :  { %vm223_vm3 = vmand %vm57_vm2, %vm26_vm1 }
   0xb   :  { %v35_v15 = vrot.slane %v34_v12, 1  ;;  %v76_v16 = vsel %vm223_vm3, 1, %v198_v2  ;;  %p182_p4 = pnand %p181_p3, %p175_p0 }
   0xc   :  { %v77_v17 = vadd.s32 %v76_v16, %v75_v13 }
   0xd   :  { %v36_v18 = vmax.f32 %v34_v12, %v35_v15 }
   0xe   :  { %78 = vst [vmem:[#allocation4] sm:$0x1f] %v77_v17 }
   0xf   :  { %vm37_vm4 = vcmp.eq.f32.partialorder %v19_v0, %v36_v18 }
  0x10   :  { %v38_v19 = vsel %vm37_vm4, %v28_v4, 5 }
  0x11   :  { %v39_v20 = vsel %vm29_vm0, %v38_v19, 2147483647 }
  0x12   :  { %v40_v21 = vrot.slane %v39_v20, 4 }
  0x14   :  { %vm41_vm5 = vcmp.lt.s32.totalorder %v39_v20, %v40_v21 }
  0x15   :  { %v42_v22 = vsel %vm41_vm5, %v39_v20, %v40_v21  ;;  %v112_v35 = vld [vmem:[#allocation4] sm:$0x1f] }
  0x16   :  { %v43_v23 = vrot.slane %v42_v22, 2  ;;  %v113_v36 = vsel %vm29_vm0, %v112_v35, 0 }
  0x17   :  { %v115_v41 = vshrl.u32 %v113_v36, 16  ;;  %v114_v42 = vand.u32 65535, %v113_v36 }
  0x18   :  { %vm44_vm6 = vcmp.lt.s32.totalorder %v42_v22, %v43_v23 }
  0x19   :  { %v45_v24 = vsel %vm44_vm6, %v42_v22, %v43_v23  ;;  %v117_v47 = vcvt.s32.f32 %v115_v41  ;;  %v116_v48 = vcvt.s32.f32 %v114_v42 }
  0x1a   :  { %v46_v25 = vrot.slane %v45_v24, 1 }
  0x1c   :  { %vm47_vm7 = vcmp.lt.s32.totalorder %v45_v24, %v46_v25 }
  0x1d   :  { %v48_v26 = vsel %vm47_vm7, %v45_v24, %v46_v25 }
  0x1e   :  { %vm49_vm8 = vcmp.eq.s32.totalorder %v48_v26, %v28_v4  ;;  %vm59_vm9 = vcmp.eq.s32.totalorder %v48_v26, %v20_v6 }
  0x1f   :  { %vm52_vm10 = vmand %vm49_vm8, %vm26_vm1  ;;  %v60_v28 = vsel %vm59_vm9, 1, %v198_v2 }
  0x20   :  { %v72_v29 = vsel %vm52_vm10, 1, %v198_v2  ;;  %v64_v30 = vrot.slane %v60_v28, %v55_v9 }
  0x21   :  { %v73_v31 = vadd.s32 %v72_v29, %v71_v27 }
  0x22   :  { %vm65_vm11 = vcmp.eq.s32.totalorder %v64_v30, 1 }
  0x23   :  { %74 = vst [vmem:[#allocation3] sm:$0x1f] %v73_v31  ;;  %vm66_vm12 = vmand %vm223_vm3, %vm65_vm11 }
  0x24   :  { %v68_v33 = vsel %vm66_vm12, 1, %v198_v2 }
  0x25   :  { %v69_v34 = vadd.s32 %v68_v33, %v67_v32 }
  0x27   :  { %70 = vst [vmem:[#allocation2] sm:$0x1f] %v69_v34 }
  0x2a   :  { %v97_v37 = vld [vmem:[#allocation3] sm:$0x1f] }
  0x2b   :  { %v98_v38 = vsel %vm29_vm0, %v97_v37, 0 }
  0x2c   :  { %v100_v39 = vshrl.u32 %v98_v38, 16  ;;  %v99_v40 = vand.u32 65535, %v98_v38 }
  0x2e   :  { %v102_v43 = vcvt.s32.f32 %v100_v39  ;;  %v101_v44 = vcvt.s32.f32 %v99_v40  ;;  %v82_v45 = vld [vmem:[#allocation2] sm:$0x1f] }
  0x2f   :  { %v83_v46 = vsel %vm29_vm0, %v82_v45, 0 }
  0x30   :  { %105 = vadd.xlane.f32.xlu0 %v102_v43  ;;  %103 = vadd.xlane.f32.xlu1 %v101_v44  ;;  %v85_v49 = vshrl.u32 %v83_v46, 16  ;;  %v84_v50 = vand.u32 65535, %v83_v46 }
  0x32   :  { %v87_v51 = vcvt.s32.f32 %v85_v49  ;;  %v86_v52 = vcvt.s32.f32 %v84_v50 }
  0x34   :  { %120 = vadd.xlane.f32.xlu0 %v117_v47  ;;  %118 = vadd.xlane.f32.xlu1 %v116_v48 }
  0x38   :  { %90 = vadd.xlane.f32.xlu0 %v87_v51  ;;  %88 = vadd.xlane.f32.xlu1 %v86_v52 }
  0xbd   :  { %v106_v53 = vpop.xlane.xlu0 %105  ;;  %v104_v54 = vpop.xlane.xlu1 %103 }
  0xbe   :  { %v108_v55 = vcvt.f32.s32 %v106_v53  ;;  %v107_v57 = vcvt.f32.s32 %v104_v54 }
  0xc0   :  { %v109_v56 = vshll.u32 %v108_v55, 16 }
  0xc1   :  { %v121_v58 = vpop.xlane.xlu0 %120  ;;  %v119_v59 = vpop.xlane.xlu1 %118 }
  0xc2   :  { %v123_v60 = vcvt.f32.s32 %v121_v58  ;;  %v122_v61 = vcvt.f32.s32 %v119_v59  ;;  %v110_v62 = vadd.s32 %v109_v56, %v107_v57 }
  0xc4   :  { %v124_v63 = vshll.u32 %v123_v60, 16  ;;  %v111_v4 = vcvt.s32.f32 %v110_v62 }
  0xc5   :  { %v91_v0 = vpop.xlane.xlu0 %90  ;;  %v89_v3 = vpop.xlane.xlu1 %88 }
  0xc6   :  { %v125_v1 = vadd.s32 %v124_v63, %v122_v61  ;;  %v93_v2 = vcvt.f32.s32 %v91_v0  ;;  %v92_v7 = vcvt.f32.s32 %v89_v3 }
  0xc8   :  { %v126_v5 = vcvt.s32.f32 %v125_v1  ;;  %v94_v6 = vshll.u32 %v93_v2, 16 }
  0xca   :  { %v127_v8 = vadd.f32 %v126_v5, %v111_v4  ;;  %v134_v9 = vsel %vm29_vm0, %v126_v5, 0.0  ;;  %v95_v13 = vadd.s32 %v94_v6, %v92_v7 }
  0xcb   :  { %v135_v10 = vrot.slane %v134_v9, 4 }
  0xcc   :  { %vm128_vm13 = vcmp.gt.f32.partialorder %v127_v8, 0.0  ;;  %v96_v16 = vcvt.s32.f32 %v95_v13 }
  0xcd   :  { %v130_v11 = vsel %vm128_vm13, %v127_v8, 1.0  ;;  %v136_v12 = vadd.f32 %v135_v10, %v134_v9 }
  0xce   :  { %170 = vrcp.f32 %v130_v11  ;;  %v129_v18 = vmul.f32 2.0, %v96_v16 }
  0xcf   :  { %v137_v14 = vrot.slane %v136_v12, 2 }
  0xd1   :  { %v138_v15 = vadd.f32 %v137_v14, %v136_v12 }
  0xd3   :  { %v139_v17 = vrot.slane %v138_v15, 1 }
  0xd5   :  { %v140_v20 = vadd.f32 %v139_v17, %v138_v15 }
  0xd7   :  { %v149_v23 = vmax.f32 %v140_v20, 1.0 }
  0xd8   :  { %v171_v19 = vpop.eup %170 }
  0xd9   :  { %v132_v21 = vmul.f32 %v171_v19, %v129_v18  ;;  %172 = vrcp.f32 %v149_v23 }
  0xdb   :  { %v133_v22 = vsel %vm128_vm13, %v132_v21, 1.0 }
  0xdc   :  { %v141_v24 = vmul.f32 %v133_v22, %v126_v5 }
  0xde   :  { %v142_v25 = vsel %vm29_vm0, %v141_v24, 0.0 }
  0xdf   :  { %v143_v26 = vrot.slane %v142_v25, 4 }
  0xe1   :  { %v144_v27 = vadd.f32 %v143_v26, %v142_v25 }
  0xe3   :  { %v145_v28 = vrot.slane %v144_v27, 2  ;;  %v173_v32 = vpop.eup %172 }
  0xe5   :  { %v146_v29 = vadd.f32 %v145_v28, %v144_v27 }
  0xe7   :  { %v147_v30 = vrot.slane %v146_v29, 1 }
  0xe9   :  { %v148_v31 = vadd.f32 %v147_v30, %v146_v29 }
  0xeb   :  { %v151_v33 = vmul.f32 %v173_v32, %v148_v31 }
  0xed   :  { %v152_v34 = vsel %vm29_vm0, %v133_v22, %v151_v33 }
  0xee   :  { %153 = vst [vmem:[#allocation5] sm:$0xff] %v152_v34 }
  0xef   :  { %185 = shalt.err (!%p182_p4)
}
  0xf0   :  { %s186_s16 = scalar_lea.hbm %s253_s2, 128 }
  0xf1   :  { %p187_p5 = scmp.ne.s32.totalorder %s253_s2, %s186_s16  ;;  %p190_p6 = scmp.lt.u32.totalorder %s186_s16, %s253_s2 }
  0xf3   :  { %p192_p7 = pnand %p190_p6, %p187_p5 }
  0xf5   :  { %195 = shalt.err (!%p192_p7)
}
  0xf6   :  { %163 = dma.vmem_to_hbm [thread:$0]  %s161_s1, 128, %s253_s2, [#allocation6]  }
  0xf7   :  { %196 = dma.done.wait [#allocation6], 128  }
  0xf8   :  { %197 = vsyncadd [#allocation6], 4294967168 }
  0xf9   :  { %167 = vsyncpa [#allocation6], 1 }

</bundles_post_ra>
